<compile_context>
chip_gen: v6e
topology: v6e:2x2x1
jax: 0.10.0
libtpu: 0.0.40
codegen_flags: <defaults>
</compile_context>

<pallas_src>
import jax
import jax.numpy as jnp
from jax.experimental import pallas as pl
from jax.experimental.pallas import tpu as pltpu


def _round_up(n, m):
    return ((n + m - 1) // m) * m


def _vmem_budget():
    """Return (target_tile_bytes, vmem_limit_bytes) picked per TPU generation."""
    cap = None
    try:
        info = pltpu.get_tpu_info()
        for name in ("vmem_capacity_bytes", "vmem_bytes", "vmem_size_bytes"):
            val = getattr(info, name, None)
            if val:
                cap = int(val)
                break
    except Exception:
        cap = None
    if cap is None or cap <= 64 * 1024 * 1024:
        # v7x-class (64 MiB physical VMEM, 2 TCs) or unknown: conservative.
        return 8 * 1024 * 1024, 48 * 1024 * 1024
    # v5e / v6e: 128 MiB physical VMEM -> big streaming tiles.
    return 16 * 1024 * 1024, 64 * 1024 * 1024


def _pick_row_tile(total_rows, bytes_per_row, target_tile_bytes, min_steps=8):
    """Rows per grid step: as large as the VMEM target allows, but keep at
    least `min_steps` grid steps when the data is big enough (pipelining and
    both TensorCores on v7x)."""
    if total_rows <= 8:
        return max(int(total_rows), 1)               # single full-extent block
    tile = max(8, (target_tile_bytes // bytes_per_row) // 8 * 8)
    tile = min(tile, (total_rows // 8) * 8)           # never exceed the data
    steps_cap = _round_up(pl.cdiv(total_rows, min_steps), 8)
    tile = max(8, min(tile, steps_cap))
    return tile


def _quad_packed_kernel(x_ref, c_ref, w_ref, sel_ref, o_ref):
    # Lane-dense packed layout (dim | 128):
    #   x_ref  : (tr, 128)  -- 128 // dim samples per row, dim lanes each
    #   c_ref  : (1, 128)   -- c tiled along lanes (VMEM resident)
    #   w_ref  : (1, 128)   -- softplus(p) tiled along lanes (VMEM resident)
    #   sel_ref: (128, g)   -- 0/1 segmented-sum matrix, g = 128 // dim
    #   o_ref  : (tr, g)
    d = x_ref[...] - c_ref[...]
    v = d * d * w_ref[...]
    o_ref[...] = jnp.dot(
        v, sel_ref[...], preferred_element_type=jnp.float32
    ).astype(o_ref.dtype)


def _quad_rowmajor_kernel(x_ref, c_ref, w_ref, o_ref):
    # Natural layout, any dim (dim == full extent -> contiguous DMA):
    #   x_ref : (tr, dim), c_ref / w_ref : (1, dim) resident, o_ref : (tr, 1)
    d = x_ref[...] - c_ref[...]
    o_ref[...] = jnp.sum(
        d * d * w_ref[...], axis=-1, keepdims=True
    ).astype(o_ref.dtype)


def quadratic_module(x, c, p):
    """Pallas implementation of QuadraticModule.forward.

    x: (..., dim) float32, c: (dim,), p: (dim,)  ->  (..., 1)
    """
    orig_shape = x.shape
    dim = orig_shape[-1]
    x2d = x.reshape(-1, dim)                      # free (contiguous) reshape
    batch = x2d.shape[0]
    dtype = x2d.dtype
    itemsize = jnp.dtype(dtype).itemsize

    target_tile_bytes, vmem_limit = _vmem_budget()
    compiler_params = pltpu.CompilerParams(
        dimension_semantics=("parallel",),        # shard grid steps over v7x TCs
        vmem_limit_bytes=vmem_limit,
    )

    # softplus(p) once, outside the kernel (numerically stable; identical to
    # log(1 + exp(p)) wherever the literal expression does not overflow).
    w = jax.nn.softplus(p.astype(jnp.float32)).astype(dtype)
    c = c.astype(dtype)

    bytes_accessed = itemsize * (batch * dim + batch + 2 * dim)
    use_packed = (dim < 128) and (128 % dim == 0) and ((batch * dim) % 128 == 0)

    if use_packed:
        g = 128 // dim
        rows = (batch * dim) // 128
        xr = x2d.reshape(rows, 128)               # free (contiguous) reshape
        c_t = jnp.tile(c, g).reshape(1, 128)
        w_t = jnp.tile(w, g).reshape(1, 128)
        sel = (jnp.arange(128)[:, None] // dim
               == jnp.arange(g)[None, :]).astype(dtype)

        tr = _pick_row_tile(rows, 128 * itemsize, target_tile_bytes)
        out = pl.pallas_call(
            _quad_packed_kernel,
            out_shape=jax.ShapeDtypeStruct((rows, g), dtype),
            grid=(pl.cdiv(rows, tr),),
            in_specs=[
                pl.BlockSpec((tr, 128), lambda i: (i, 0)),
                pl.BlockSpec((1, 128), lambda i: (0, 0)),
                pl.BlockSpec((1, 128), lambda i: (0, 0)),
                pl.BlockSpec((128, g), lambda i: (0, 0)),
            ],
            out_specs=pl.BlockSpec((tr, g), lambda i: (i, 0)),
            compiler_params=compiler_params,
            cost_estimate=pl.CostEstimate(
                flops=6 * batch * dim, transcendentals=0,
                bytes_accessed=bytes_accessed),
        )(xr, c_t, w_t, sel)
        out = out.reshape(batch)                  # rows * g == batch, free
    else:
        c_r = c.reshape(1, dim)
        w_r = w.reshape(1, dim)
        tr = _pick_row_tile(batch, dim * itemsize, target_tile_bytes)
        out = pl.pallas_call(
            _quad_rowmajor_kernel,
            out_shape=jax.ShapeDtypeStruct((batch, 1), dtype),
            grid=(pl.cdiv(batch, tr),),
            in_specs=[
                pl.BlockSpec((tr, dim), lambda i: (i, 0)),
                pl.BlockSpec((1, dim), lambda i: (0, 0)),
                pl.BlockSpec((1, dim), lambda i: (0, 0)),
            ],
            out_specs=pl.BlockSpec((tr, 1), lambda i: (i, 0)),
            compiler_params=compiler_params,
            cost_estimate=pl.CostEstimate(
                flops=4 * batch * dim, transcendentals=0,
                bytes_accessed=bytes_accessed),
        )(x2d, c_r, w_r)
        out = out.reshape(batch)

    return out.reshape(orig_shape[:-1] + (1,))


def _reference(x, c, p):
    # Literal translation of the PyTorch forward.
    return jnp.sum((x - c) ** 2 * jnp.log1p(jnp.exp(p)), axis=-1, keepdims=True)


if __name__ == "__main__":
    key = jax.random.PRNGKey(0)

    # case 1: packed lane-dense path (dim | 128 and batch*dim % 128 == 0)
    dim = 32
    k1, k2, k3, key = jax.random.split(key, 4)
    c = jax.random.normal(k1, (dim,), dtype=jnp.float32) * 0.01
    p = jax.random.normal(k2, (dim,), dtype=jnp.float32) * 0.01
    x = jax.random.normal(k3, (4, 8, dim), dtype=jnp.float32)   # batch = 32
    out = jax.block_until_ready(quadratic_module(x, c, p))
    ref = _reference(x, c, p)
    assert out.shape == (4, 8, 1)
    assert jnp.allclose(out, ref, atol=1e-4, rtol=5e-3)

    # case 2: row-major path, lane-aligned dim, clipped (partial) last block
    dim2 = 128
    k1, k2, k3, key = jax.random.split(key, 4)
    c2 = jax.random.normal(k1, (dim2,), dtype=jnp.float32) * 0.01
    p2 = jax.random.normal(k2, (dim2,), dtype=jnp.float32) * 0.01
    x2 = jax.random.normal(k3, (10, dim2), dtype=jnp.float32)   # batch = 10
    out2 = jax.block_until_ready(quadratic_module(x2, c2, p2))
    ref2 = _reference(x2, c2, p2)
    assert out2.shape == (10, 1)
    assert jnp.allclose(out2, ref2, atol=1e-5, rtol=1e-5)

    # case 3: row-major fallback, dim not dividing 128, tiny batch (< 8)
    dim3 = 24
    k1, k2, k3, key = jax.random.split(key, 4)
    c3 = jax.random.normal(k1, (dim3,), dtype=jnp.float32) * 0.01
    p3 = jax.random.normal(k2, (dim3,), dtype=jnp.float32) * 0.01
    x3 = jax.random.normal(k3, (5, dim3), dtype=jnp.float32)    # batch = 5
    out3 = jax.block_until_ready(quadratic_module(x3, c3, p3))
    ref3 = _reference(x3, c3, p3)
    assert out3.shape == (5, 1)
    assert jnp.allclose(out3, ref3, atol=1e-5, rtol=1e-5)

    print("KERNEL_OK")
</pallas_src>

<mosaic_0001>
module attributes {stable_mosaic.version = 11 : i64} {
  func.func @_quad_packed_kernel(%arg0: i32, %arg1: memref<8x128xf32, #tpu.memory_space<vmem>>, %arg2: memref<1x128xf32, #tpu.memory_space<vmem>>, %arg3: memref<1x128xf32, #tpu.memory_space<vmem>>, %arg4: memref<128x4xf32, #tpu.memory_space<vmem>>, %arg5: memref<8x4xf32, #tpu.memory_space<vmem>>) attributes {dimension_semantics = [#tpu.dimension_semantics<parallel>], iteration_bounds = array<i64: 1>, scalar_prefetch = 0 : i64, scratch_operands = 0 : i64, tpu.core_type = #tpu.core_type<tc>, window_params = [{transform_indices = @transform_0, window_bounds = array<i64: 8, 128>}, {pipeline_mode = #tpu.pipeline_mode<synchronous>, transform_indices = @transform_1, window_bounds = array<i64: 1, 128>}, {pipeline_mode = #tpu.pipeline_mode<synchronous>, transform_indices = @transform_2, window_bounds = array<i64: 1, 128>}, {pipeline_mode = #tpu.pipeline_mode<synchronous>, transform_indices = @transform_3, window_bounds = array<i64: 128, 4>}, {transform_indices = @transform_4, window_bounds = array<i64: 8, 4>}]} {
    %c0 = arith.constant 0 : index
    %c0_0 = arith.constant 0 : index
    %0 = vector.load %arg1[%c0, %c0_0] : memref<8x128xf32, #tpu.memory_space<vmem>>, vector<8x128xf32>
    %c0_1 = arith.constant 0 : index
    %c0_2 = arith.constant 0 : index
    %1 = vector.load %arg2[%c0_1, %c0_2] : memref<1x128xf32, #tpu.memory_space<vmem>>, vector<1x128xf32>
    %2 = vector.broadcast %1 : vector<1x128xf32> to vector<8x128xf32>
    %3 = arith.subf %0, %2 : vector<8x128xf32>
    %4 = arith.mulf %3, %3 : vector<8x128xf32>
    %c0_3 = arith.constant 0 : index
    %c0_4 = arith.constant 0 : index
    %5 = vector.load %arg3[%c0_3, %c0_4] : memref<1x128xf32, #tpu.memory_space<vmem>>, vector<1x128xf32>
    %6 = vector.broadcast %5 : vector<1x128xf32> to vector<8x128xf32>
    %7 = arith.mulf %4, %6 : vector<8x128xf32>
    %c0_5 = arith.constant 0 : index
    %c0_6 = arith.constant 0 : index
    %8 = vector.load %arg4[%c0_5, %c0_6] : memref<128x4xf32, #tpu.memory_space<vmem>>, vector<128x4xf32>
    %cst = arith.constant dense<0.000000e+00> : vector<8x4xf32>
    %9 = tpu.matmul %7, %8, %cst {dimension_numbers = #tpu.dot_dimension_numbers<[1], [0], [0], [1], [0, 0, 1, 1], [], []>} : vector<8x128xf32>, vector<128x4xf32>, vector<8x4xf32> -> vector<8x4xf32>
    %c0_7 = arith.constant 0 : index
    %c0_8 = arith.constant 0 : index
    %10 = vector.load %arg5[%c0_7, %c0_8] : memref<8x4xf32, #tpu.memory_space<vmem>>, vector<8x4xf32>
    tpu.vector_store %arg5[%c0_7, %c0_8], %9 {strides = array<i32>} : memref<8x4xf32, #tpu.memory_space<vmem>>, vector<8x4xf32>,
    return
  }
  func.func @transform_0(%arg0: i32) -> (i32, i32) {
    %c0_i32 = arith.constant 0 : i32
    %c0_i32_0 = arith.constant 0 : i32
    return %arg0, %c0_i32 : i32, i32
  }
  func.func @transform_1(%arg0: i32) -> (i32, i32) {
    %c0_i32 = arith.constant 0 : i32
    %c0_i32_0 = arith.constant 0 : i32
    %c0_i32_1 = arith.constant 0 : i32
    return %c0_i32, %c0_i32_0 : i32, i32
  }
  func.func @transform_2(%arg0: i32) -> (i32, i32) {
    %c0_i32 = arith.constant 0 : i32
    %c0_i32_0 = arith.constant 0 : i32
    %c0_i32_1 = arith.constant 0 : i32
    return %c0_i32, %c0_i32_0 : i32, i32
  }
  func.func @transform_3(%arg0: i32) -> (i32, i32) {
    %c0_i32 = arith.constant 0 : i32
    %c0_i32_0 = arith.constant 0 : i32
    %c0_i32_1 = arith.constant 0 : i32
    return %c0_i32, %c0_i32_0 : i32, i32
  }
  func.func @transform_4(%arg0: i32) -> (i32, i32) {
    %c0_i32 = arith.constant 0 : i32
    %c0_i32_0 = arith.constant 0 : i32
    return %arg0, %c0_i32 : i32, i32
  }
}

</mosaic_0001>

<bundles_post_ra>
// kernel: tpu_custom_call.1
= control target key start
LH: loop header
LB: loop body
LE: loop exit
PB: predicated region body
PF: predicated region fallthrough
CT: control target
= control target key end

     0   :  { %v183_v0 = vmov 0.0   ;;  %vm184_vm0 = vmmov 0   ;;  %vm121_vm1 = vcmask 31744   ;;  %s270_s3 = inlined_call_operand.vmem [shape: f32[128,4], index: 3, kind: input, shape index: {}]   ;;  %s271_s0 = inlined_call_operand.vmem [shape: f32[8,128], index: 0, kind: input, shape index: {}]   ;;  %s272_s1 = inlined_call_operand.vmem [shape: f32[1,128], index: 1, kind: input, shape index: {}]   ;;  %s273_s2 = inlined_call_operand.vmem [shape: f32[1,128], index: 2, kind: input, shape index: {}]   ;;  %s274_s4 = inlined_call_operand.vmem [shape: f32[8,4], index: 4, kind: output, shape index: {}]  }
   0x1   :  { %146 = vmatprep.subr.mxu0 %v183_v0  ;;  %v50_v1 = vld [vmem:[%s270_s3 + $0x78] sm:$0xff]  ;;  %v49_v2 = vld [vmem:[%s270_s3 + $0x70] sm:$0xff]  ;;  %178 = vmatprep.mubr.msk.f32.mxu0 %vm184_vm0, %v183_v0  ;;  %v48_v3 = vld [vmem:[%s270_s3 + $0x68] sm:$0xff] }
   0x2   :  { %147 = vmatpush3.msra.mxu0 %v50_v1  ;;  %v47_v4 = vld [vmem:[%s270_s3 + $0x60] sm:$0xff]  ;;  %v46_v5 = vld [vmem:[%s270_s3 + $0x58] sm:$0xff]  ;;  %v45_v6 = vld [vmem:[%s270_s3 + $0x50] sm:$0xff] }
   0x3   :  { %148 = vmatprep.subr.mxu0 %v183_v0  ;;  %v44_v7 = vld [vmem:[%s270_s3 + $0x48] sm:$0xff]  ;;  %v43_v8 = vld [vmem:[%s270_s3 + $0x40] sm:$0xff]  ;;  %v42_v9 = vld [vmem:[%s270_s3 + $0x38] sm:$0xff] }
   0x4   :  { %149 = vmatpush3.msra.mxu0 %v49_v2  ;;  %v41_v10 = vld [vmem:[%s270_s3 + $0x30] sm:$0xff]  ;;  %v17_v11 = vld [vmem:[%s271_s0] sm:$0xff]  ;;  %v40_v13 = vld [vmem:[%s270_s3 + $0x28] sm:$0xff] }
   0x5   :  { %150 = vmatprep.subr.mxu0 %v183_v0  ;;  %v127_v12 = vld [vmem:[%s272_s1] ss:$0 sm:$0xff]  ;;  %v38_v16 = vld [vmem:[%s270_s3 + $0x18] sm:$0xff]  ;;  %v37_v17 = vld [vmem:[%s270_s3 + $0x10] sm:$0xff] }
   0x6   :  { %151 = vmatpush3.msra.mxu0 %v48_v3  ;;  %v39_v14 = vld [vmem:[%s270_s3 + $0x20] sm:$0xff]  ;;  %v25_v15 = vsub.f32 %v17_v11, %v127_v12  ;;  %v36_v20 = vld [vmem:[%s270_s3 + $0x8] sm:$0xff] }
   0x7   :  { %152 = vmatprep.subr.mxu0 %v183_v0  ;;  %v128_v19 = vld [vmem:[%s273_s2] ss:$0 sm:$0xff] }
   0x8   :  { %153 = vmatpush3.msra.mxu0 %v47_v4  ;;  %v26_v18 = vmul.f32 %v25_v15, %v25_v15  ;;  %v35_v21 = vld [vmem:[%s270_s3] sm:$0xff] }
   0x9   :  { %154 = vmatprep.subr.mxu0 %v183_v0 }
   0xa   :  { %155 = vmatpush3.msra.mxu0 %v46_v5  ;;  %v34_v22 = vmul.f32 %v128_v19, %v26_v18 }
   0xb   :  { %156 = vmatprep.subr.mxu0 %v183_v0 }
   0xc   :  { %157 = vmatpush3.msra.mxu0 %v45_v6 }
   0xd   :  { %158 = vmatprep.subr.mxu0 %v183_v0 }
   0xe   :  { %159 = vmatpush3.msra.mxu0 %v44_v7 }
   0xf   :  { %160 = vmatprep.subr.mxu0 %v183_v0 }
  0x10   :  { %161 = vmatpush3.msra.mxu0 %v43_v8 }
  0x11   :  { %162 = vmatprep.subr.mxu0 %v183_v0 }
  0x12   :  { %163 = vmatpush3.msra.mxu0 %v42_v9 }
  0x13   :  { %164 = vmatprep.subr.mxu0 %v183_v0 }
  0x14   :  { %165 = vmatpush3.msra.mxu0 %v41_v10 }
  0x15   :  { %166 = vmatprep.subr.mxu0 %v183_v0 }
  0x16   :  { %167 = vmatpush3.msra.mxu0 %v40_v13 }
  0x17   :  { %168 = vmatprep.subr.mxu0 %v183_v0 }
  0x18   :  { %169 = vmatpush3.msra.mxu0 %v39_v14 }
  0x19   :  { %170 = vmatprep.subr.mxu0 %v183_v0 }
  0x1a   :  { %171 = vmatpush3.msra.mxu0 %v38_v16 }
  0x1b   :  { %172 = vmatprep.subr.mxu0 %v183_v0 }
  0x1c   :  { %173 = vmatpush3.msra.mxu0 %v37_v17 }
  0x1d   :  { %174 = vmatprep.subr.mxu0 %v183_v0 }
  0x1e   :  { %175 = vmatpush3.msra.mxu0 %v36_v20 }
  0x1f   :  { %176 = vmatprep.subr.mxu0 %v183_v0 }
  0x20   :  { %177 = vmatpush3.msra.mxu0 %v35_v21 }
  0x21   :  { %179 = vmatmul.mubr.f32.vlgmr.msra.gmra.mxu0 %v34_v22 }
  0xe1   :  { %v117_v23 = vpop.f32.mrf.mxu0 }
  0xe2   :  { %122 = vst.msk [vmem:[%s274_s4] sm:$0xff] %vm121_vm1, %v117_v23 }
  0xe3   :  { %v180_v24 = vpop.f32.mrf.mxu0 }

</bundles_post_ra>
